<compile_context>
chip_gen: v7x
topology: tpu7x:2x2x1
jax: 0.10.0
libtpu: 0.0.40
codegen_flags: <defaults>
</compile_context>

<pallas_src>
import functools

import jax
import jax.numpy as jnp
from jax import lax
from jax.experimental import pallas as pl
from jax.experimental.pallas import tpu as pltpu


def _round_up(v, m):
    return (v + m - 1) // m * m


def _choose_block_b(b, C, H, W, H_out, W_out, itemsize, vmem_budget_bytes):
    """Largest divisor of b whose double-buffered (8,128)-padded tiles fit."""
    per_in = C * _round_up(H, 8) * _round_up(W, 128) * itemsize
    per_out = C * _round_up(H_out, 8) * _round_up(W_out, 128) * itemsize
    per_patch = 2 * (per_in + per_out)  # double-buffered input + output
    cap = max(1, vmem_budget_bytes // per_patch)
    if b >= 2:
        cap = min(cap, max(1, b // 2))  # keep >= 2 grid steps (megacore / v7x)
    cap = min(cap, b)
    for d in range(cap, 0, -1):
        if b % d == 0:
            return d
    return 1


def _reflection_pad_zero_kernel(x_ref, o_ref, *, pad, P):
    """Reflection-pad H/W by `pad` and zero borders of outer-image patches.

    x_ref: (Bt, C, H, W) VMEM tile (Bt patches)
    o_ref: (Bt, C, H+2p, W+2p) VMEM tile
    """
    Bt, C, H, W = x_ref.shape
    H_out, W_out = H + 2 * pad, W + 2 * pad
    dtype = o_ref.dtype

    x = x_ref[...]  # (Bt, C, H, W) — loaded once, sliced below

    # Per-patch boundary flags, vectorized across the Bt patches of this block.
    g = pl.program_id(0) * Bt + lax.broadcasted_iota(jnp.int32, (Bt, 1, 1, 1), 0)
    pos = g % (P * P)            # patch position within its image
    colp = g % P                 # patch column within its image
    is_top = pos < P
    is_bot = pos >= P * P - P
    is_left = colp == 0
    is_right = colp == P - 1

    # ---- interior: straight copy, never zeroed (bulk of the data) ----
    o_ref[:, :, pad:pad + H, pad:pad + W] = x

    # ---- left / right border columns over the interior rows ----
    left_cols = jnp.concatenate(
        [x[:, :, :, pad - c:pad - c + 1] for c in range(pad)], axis=-1)
    o_ref[:, :, pad:pad + H, 0:pad] = jnp.where(is_left, 0.0, left_cols).astype(dtype)

    right_cols = jnp.concatenate(
        [x[:, :, :, W - 2 - c:W - 1 - c] for c in range(pad)], axis=-1)
    o_ref[:, :, pad:pad + H, W + pad:W_out] = jnp.where(
        is_right, 0.0, right_cols).astype(dtype)

    # ---- top / bottom border rows (full width, incl. corners) ----
    def w_reflect(row):
        # row: (Bt, C, 1, W) -> (Bt, C, 1, W_out); corner cols zeroed for
        # left/right boundary patches (matches x[left,:,:, :pad]=0 etc.).
        left = [jnp.where(is_left, 0.0, row[:, :, :, pad - c:pad - c + 1])
                for c in range(pad)]
        right = [jnp.where(is_right, 0.0, row[:, :, :, W - 2 - c:W - 1 - c])
                 for c in range(pad)]
        return jnp.concatenate(left + [row] + right, axis=-1)

    for i in range(pad):
        # Output row i mirrors input row (pad - i); whole row zeroed on top patches.
        top_row = w_reflect(x[:, :, pad - i:pad - i + 1, :])
        o_ref[:, :, i:i + 1, :] = jnp.where(is_top, 0.0, top_row).astype(dtype)

        # Output row (H + pad + i) mirrors input row (H - 2 - i).  PyTorch only
        # zeroes the single row H_out - pad (i == 0) on bottom patches.
        bot_row = w_reflect(x[:, :, H - 2 - i:H - 1 - i, :])
        if i == 0:
            bot_row = jnp.where(is_bot, 0.0, bot_row)
        o_ref[:, :, H + pad + i:H + pad + i + 1, :] = bot_row.astype(dtype)


def reflection_pad2d_forward(x, padding, num_patches, *, block_b=None,
                             vmem_budget_bytes=12 * 1024 * 1024):
    b, C, H, W = x.shape
    assert 1 <= padding < min(H, W), "reflection pad requires 1 <= pad < H, W"
    assert b % (num_patches ** 2) == 0, "batch must be B * P**2 patches"
    H_out, W_out = H + 2 * padding, W + 2 * padding
    itemsize = jnp.dtype(x.dtype).itemsize

    if block_b is None:
        block_b = _choose_block_b(b, C, H, W, H_out, W_out, itemsize,
                                  vmem_budget_bytes)
    assert b % block_b == 0

    kernel = functools.partial(
        _reflection_pad_zero_kernel, pad=padding, P=num_patches)

    in_bytes = b * C * H * W * itemsize
    out_bytes = b * C * H_out * W_out * itemsize

    return pl.pallas_call(
        kernel,
        out_shape=jax.ShapeDtypeStruct((b, C, H_out, W_out), x.dtype),
        grid=(b // block_b,),
        in_specs=[pl.BlockSpec((block_b, C, H, W), lambda i: (i, 0, 0, 0))],
        out_specs=pl.BlockSpec((block_b, C, H_out, W_out), lambda i: (i, 0, 0, 0)),
        compiler_params=pltpu.CompilerParams(
            dimension_semantics=("parallel",),
            vmem_limit_bytes=32 * 1024 * 1024,
        ),
        cost_estimate=pl.CostEstimate(
            flops=0, transcendentals=0, bytes_accessed=in_bytes + out_bytes),
    )(x)


def get_error(padded_x, P):
    """Plain-JAX port of PaddingModule.get_error (side-effect loss in PyTorch)."""
    b, _, ph, pw = padded_x.shape
    B = b // (P * P)
    patch_h = ph - 2
    patch_w = pw - 2
    vertical_idx = [
        jnp.tile(jnp.arange(i * P, (i + 1) * P), B)
        + jnp.repeat(jnp.arange(0, b, P * P), P)
        for i in range(P)
    ]
    horizontal_idx = [jnp.arange(i, b, P) for i in range(P)]

    cat = lambda parts: jnp.concatenate(parts, axis=0)
    pred_top = cat([padded_x[idx, :, 0, 1:patch_w + 1] for idx in vertical_idx[1:]])
    tgt_top = cat([padded_x[idx, :, patch_h, 1:patch_w + 1] for idx in vertical_idx[:P - 1]])
    pred_bot = cat([padded_x[idx, :, patch_h + 1, 1:patch_w + 1] for idx in vertical_idx[:P - 1]])
    tgt_bot = cat([padded_x[idx, :, 1, 1:patch_w + 1] for idx in vertical_idx[1:]])
    pred_left = cat([padded_x[idx, :, 1:patch_h + 1, 0] for idx in horizontal_idx[1:]])
    tgt_left = cat([padded_x[idx, :, 1:patch_h + 1, patch_w] for idx in horizontal_idx[:P - 1]])
    pred_right = cat([padded_x[idx, :, 1:patch_h + 1, patch_w + 1] for idx in horizontal_idx[:P - 1]])
    tgt_right = cat([padded_x[idx, :, 1:patch_h + 1, 1] for idx in horizontal_idx[1:]])

    mse = lambda a, t: jnp.mean((a - t) ** 2)
    return (
        mse(pred_top, tgt_top)
        + mse(pred_bot, tgt_bot)
        + mse(pred_left, tgt_left)
        + mse(pred_right, tgt_right)
    ) / 4.0


def reference_forward(x, padding, P):
    """Pure-JAX reference for correctness checking."""
    xp = jnp.pad(
        x, ((0, 0), (0, 0), (padding, padding), (padding, padding)), mode="reflect"
    )
    b, C, Hp, Wp = xp.shape
    pos = jnp.arange(b) % (P * P)
    is_top = (pos < P)[:, None, None, None]
    is_bot = (pos >= P * P - P)[:, None, None, None]
    is_left = ((jnp.arange(b) % P) == 0)[:, None, None, None]
    is_right = ((jnp.arange(b) % P) == P - 1)[:, None, None, None]
    row = jnp.arange(Hp)[None, None, :, None]
    col = jnp.arange(Wp)[None, None, None, :]
    mask = (
        (is_top & (row < padding))
        | (is_bot & (row == Hp - padding))
        | (is_left & (col < padding))
        | (is_right & (col >= Wp - padding))
    )
    return jnp.where(mask, 0.0, xp)


if __name__ == "__main__":
    padding = 1
    num_patches = 2          # P
    B_images = 2             # full images; batch of patches = B * P**2
    C, H, W = 4, 16, 16
    b = B_images * num_patches ** 2   # 8 patches

    key = jax.random.PRNGKey(0)
    x = jax.random.normal(key, (b, C, H, W), dtype=jnp.float32)

    out = reflection_pad2d_forward(x, padding, num_patches)
    out = jax.block_until_ready(out)

    # Correctness check vs plain-JAX reference.
    ref = jax.block_until_ready(reference_forward(x, padding, num_patches))
    assert out.shape == (b, C, H + 2 * padding, W + 2 * padding)
    assert jnp.allclose(out, ref, atol=1e-6), "mismatch vs reference"

    # Side-effect loss from the PyTorch module (computed on the kernel output).
    loss = jax.block_until_ready(get_error(out, num_patches))
    assert jnp.isfinite(loss)

    print("KERNEL_OK")
</pallas_src>

<mosaic_0001>
module attributes {stable_mosaic.version = 11 : i64} {
  func.func @_reflection_pad_zero_kernel(%arg0: i32, %arg1: memref<4x4x16x16xf32, #tpu.memory_space<vmem>>, %arg2: memref<4x4x18x18xf32, #tpu.memory_space<vmem>>) attributes {dimension_semantics = [#tpu.dimension_semantics<parallel>], iteration_bounds = array<i64: 2>, scalar_prefetch = 0 : i64, scratch_operands = 0 : i64, tpu.core_type = #tpu.core_type<tc>, window_params = [{transform_indices = @transform_0, window_bounds = array<i64: 4, 4, 16, 16>}, {transform_indices = @transform_1, window_bounds = array<i64: 4, 4, 18, 18>}]} {
    %c0 = arith.constant 0 : index
    %c0_0 = arith.constant 0 : index
    %c0_1 = arith.constant 0 : index
    %c0_2 = arith.constant 0 : index
    %0 = vector.load %arg1[%c0, %c0_0, %c0_1, %c0_2] : memref<4x4x16x16xf32, #tpu.memory_space<vmem>>, vector<4x4x16x16xf32>
    %c4_i32 = arith.constant 4 : i32
    %1 = arith.muli %arg0, %c4_i32 : i32
    %2 = tpu.iota {dimensions = array<i32: 0>} : vector<4x1x1x1xi32>
    %3 = vector.broadcast %1 : i32 to vector<4x1x1x1xi32>
    %4 = arith.addi %3, %2 : vector<4x1x1x1xi32>
    %c4_i32_3 = arith.constant 4 : i32
    %c0_i32 = arith.constant 0 : i32
    %5 = arith.cmpi eq, %c4_i32_3, %c0_i32 : i32
    %c1_i32 = arith.constant 1 : i32
    %6 = arith.select %5, %c1_i32, %c4_i32_3 : i32
    %7 = vector.broadcast %6 : i32 to vector<4x1x1x1xi32>
    %8 = arith.remsi %4, %7 : vector<4x1x1x1xi32>
    %c0_i32_4 = arith.constant 0 : i32
    %9 = vector.broadcast %c0_i32_4 : i32 to vector<4x1x1x1xi32>
    %10 = arith.cmpi ne, %8, %9 : vector<4x1x1x1xi32>
    %c0_i32_5 = arith.constant 0 : i32
    %11 = vector.broadcast %c0_i32_5 : i32 to vector<4x1x1x1xi32>
    %12 = arith.cmpi slt, %8, %11 : vector<4x1x1x1xi32>
    %c0_i32_6 = arith.constant 0 : i32
    %13 = arith.cmpi slt, %6, %c0_i32_6 : i32
    %14 = vector.broadcast %13 : i1 to vector<4x1x1x1xi1>
    %15 = vector.broadcast %14 : vector<4x1x1x1xi1> to vector<4x1x1x1xi1>
    %16 = arith.xori %12, %15 : vector<4x1x1x1xi1>
    %17 = arith.andi %16, %10 : vector<4x1x1x1xi1>
    %18 = vector.broadcast %6 : i32 to vector<4x1x1x1xi32>
    %19 = arith.addi %8, %18 : vector<4x1x1x1xi32>
    %20 = arith.select %17, %19, %8 : vector<4x1x1x1xi1>, vector<4x1x1x1xi32>
    %c2_i32 = arith.constant 2 : i32
    %c0_i32_7 = arith.constant 0 : i32
    %21 = arith.cmpi eq, %c2_i32, %c0_i32_7 : i32
    %c1_i32_8 = arith.constant 1 : i32
    %22 = arith.select %21, %c1_i32_8, %c2_i32 : i32
    %23 = vector.broadcast %22 : i32 to vector<4x1x1x1xi32>
    %24 = arith.remsi %4, %23 : vector<4x1x1x1xi32>
    %c0_i32_9 = arith.constant 0 : i32
    %25 = vector.broadcast %c0_i32_9 : i32 to vector<4x1x1x1xi32>
    %26 = arith.cmpi ne, %24, %25 : vector<4x1x1x1xi32>
    %c0_i32_10 = arith.constant 0 : i32
    %27 = vector.broadcast %c0_i32_10 : i32 to vector<4x1x1x1xi32>
    %28 = arith.cmpi slt, %24, %27 : vector<4x1x1x1xi32>
    %c0_i32_11 = arith.constant 0 : i32
    %29 = arith.cmpi slt, %22, %c0_i32_11 : i32
    %30 = vector.broadcast %29 : i1 to vector<4x1x1x1xi1>
    %31 = vector.broadcast %30 : vector<4x1x1x1xi1> to vector<4x1x1x1xi1>
    %32 = arith.xori %28, %31 : vector<4x1x1x1xi1>
    %33 = arith.andi %32, %26 : vector<4x1x1x1xi1>
    %34 = vector.broadcast %22 : i32 to vector<4x1x1x1xi32>
    %35 = arith.addi %24, %34 : vector<4x1x1x1xi32>
    %36 = arith.select %33, %35, %24 : vector<4x1x1x1xi1>, vector<4x1x1x1xi32>
    %c2_i32_12 = arith.constant 2 : i32
    %37 = vector.broadcast %c2_i32_12 : i32 to vector<4x1x1x1xi32>
    %38 = arith.cmpi slt, %20, %37 : vector<4x1x1x1xi32>
    %c2_i32_13 = arith.constant 2 : i32
    %39 = vector.broadcast %c2_i32_13 : i32 to vector<4x1x1x1xi32>
    %40 = arith.cmpi sge, %20, %39 : vector<4x1x1x1xi32>
    %c0_i32_14 = arith.constant 0 : i32
    %41 = vector.broadcast %c0_i32_14 : i32 to vector<4x1x1x1xi32>
    %42 = arith.cmpi eq, %36, %41 : vector<4x1x1x1xi32>
    %c1_i32_15 = arith.constant 1 : i32
    %43 = vector.broadcast %c1_i32_15 : i32 to vector<4x1x1x1xi32>
    %44 = arith.cmpi eq, %36, %43 : vector<4x1x1x1xi32>
    %c0_16 = arith.constant 0 : index
    %c0_17 = arith.constant 0 : index
    %c1 = arith.constant 1 : index
    %c1_18 = arith.constant 1 : index
    %45 = vector.load %arg2[%c0_16, %c0_17, %c1, %c1_18] : memref<4x4x18x18xf32, #tpu.memory_space<vmem>>, vector<4x4x16x16xf32>
    tpu.vector_store %arg2[%c0_16, %c0_17, %c1, %c1_18], %0 {strides = array<i32>} : memref<4x4x18x18xf32, #tpu.memory_space<vmem>>, vector<4x4x16x16xf32>,
    %46 = vector.extract_strided_slice %0 {offsets = [0, 0, 0, 1], sizes = [4, 4, 16, 1], strides = [1, 1, 1, 1]} : vector<4x4x16x16xf32> to vector<4x4x16x1xf32>
    %cst = arith.constant 0.000000e+00 : f32
    %47 = vector.shape_cast %42 : vector<4x1x1x1xi1> to vector<4x1x1x1xi1>
    %48 = vector.broadcast %47 : vector<4x1x1x1xi1> to vector<4x4x16x1xi1>
    %49 = vector.broadcast %cst : f32 to vector<4x4x16x1xf32>
    %50 = arith.select %48, %49, %46 : vector<4x4x16x1xi1>, vector<4x4x16x1xf32>
    %c0_19 = arith.constant 0 : index
    %c0_20 = arith.constant 0 : index
    %c1_21 = arith.constant 1 : index
    %c0_22 = arith.constant 0 : index
    %51 = vector.load %arg2[%c0_19, %c0_20, %c1_21, %c0_22] : memref<4x4x18x18xf32, #tpu.memory_space<vmem>>, vector<4x4x16x1xf32>
    tpu.vector_store %arg2[%c0_19, %c0_20, %c1_21, %c0_22], %50 {strides = array<i32>} : memref<4x4x18x18xf32, #tpu.memory_space<vmem>>, vector<4x4x16x1xf32>,
    %52 = vector.extract_strided_slice %0 {offsets = [0, 0, 0, 14], sizes = [4, 4, 16, 1], strides = [1, 1, 1, 1]} : vector<4x4x16x16xf32> to vector<4x4x16x1xf32>
    %cst_23 = arith.constant 0.000000e+00 : f32
    %53 = vector.shape_cast %44 : vector<4x1x1x1xi1> to vector<4x1x1x1xi1>
    %54 = vector.broadcast %53 : vector<4x1x1x1xi1> to vector<4x4x16x1xi1>
    %55 = vector.broadcast %cst_23 : f32 to vector<4x4x16x1xf32>
    %56 = arith.select %54, %55, %52 : vector<4x4x16x1xi1>, vector<4x4x16x1xf32>
    %c0_24 = arith.constant 0 : index
    %c0_25 = arith.constant 0 : index
    %c1_26 = arith.constant 1 : index
    %c17 = arith.constant 17 : index
    %57 = vector.load %arg2[%c0_24, %c0_25, %c1_26, %c17] : memref<4x4x18x18xf32, #tpu.memory_space<vmem>>, vector<4x4x16x1xf32>
    tpu.vector_store %arg2[%c0_24, %c0_25, %c1_26, %c17], %56 {strides = array<i32>} : memref<4x4x18x18xf32, #tpu.memory_space<vmem>>, vector<4x4x16x1xf32>,
    %58 = vector.extract_strided_slice %0 {offsets = [0, 0, 1, 0], sizes = [4, 4, 1, 16], strides = [1, 1, 1, 1]} : vector<4x4x16x16xf32> to vector<4x4x1x16xf32>
    %59 = vector.extract_strided_slice %58 {offsets = [0, 0, 0, 1], sizes = [4, 4, 1, 1], strides = [1, 1, 1, 1]} : vector<4x4x1x16xf32> to vector<4x4x1x1xf32>
    %cst_27 = arith.constant 0.000000e+00 : f32
    %60 = vector.shape_cast %42 : vector<4x1x1x1xi1> to vector<4x1x1x1xi1>
    %61 = vector.broadcast %60 : vector<4x1x1x1xi1> to vector<4x4x1x1xi1>
    %62 = vector.broadcast %cst_27 : f32 to vector<4x4x1x1xf32>
    %63 = arith.select %61, %62, %59 : vector<4x4x1x1xi1>, vector<4x4x1x1xf32>
    %64 = vector.extract_strided_slice %58 {offsets = [0, 0, 0, 14], sizes = [4, 4, 1, 1], strides = [1, 1, 1, 1]} : vector<4x4x1x16xf32> to vector<4x4x1x1xf32>
    %cst_28 = arith.constant 0.000000e+00 : f32
    %65 = vector.shape_cast %44 : vector<4x1x1x1xi1> to vector<4x1x1x1xi1>
    %66 = vector.broadcast %65 : vector<4x1x1x1xi1> to vector<4x4x1x1xi1>
    %67 = vector.broadcast %cst_28 : f32 to vector<4x4x1x1xf32>
    %68 = arith.select %66, %67, %64 : vector<4x4x1x1xi1>, vector<4x4x1x1xf32>
    %69 = tpu.concatenate %63, %58, %68 in 3 : vector<4x4x1x1xf32>, vector<4x4x1x16xf32>, vector<4x4x1x1xf32> -> vector<4x4x1x18xf32>
    %cst_29 = arith.constant 0.000000e+00 : f32
    %70 = vector.shape_cast %38 : vector<4x1x1x1xi1> to vector<4x1x1x1xi1>
    %71 = vector.broadcast %70 : vector<4x1x1x1xi1> to vector<4x4x1x18xi1>
    %72 = vector.broadcast %cst_29 : f32 to vector<4x4x1x18xf32>
    %73 = arith.select %71, %72, %69 : vector<4x4x1x18xi1>, vector<4x4x1x18xf32>
    %c0_30 = arith.constant 0 : index
    %c0_31 = arith.constant 0 : index
    %c0_32 = arith.constant 0 : index
    %c0_33 = arith.constant 0 : index
    %74 = vector.load %arg2[%c0_30, %c0_31, %c0_32, %c0_33] : memref<4x4x18x18xf32, #tpu.memory_space<vmem>>, vector<4x4x1x18xf32>
    tpu.vector_store %arg2[%c0_30, %c0_31, %c0_32, %c0_33], %73 {strides = array<i32>} : memref<4x4x18x18xf32, #tpu.memory_space<vmem>>, vector<4x4x1x18xf32>,
    %75 = vector.extract_strided_slice %0 {offsets = [0, 0, 14, 0], sizes = [4, 4, 1, 16], strides = [1, 1, 1, 1]} : vector<4x4x16x16xf32> to vector<4x4x1x16xf32>
    %76 = vector.extract_strided_slice %75 {offsets = [0, 0, 0, 1], sizes = [4, 4, 1, 1], strides = [1, 1, 1, 1]} : vector<4x4x1x16xf32> to vector<4x4x1x1xf32>
    %cst_34 = arith.constant 0.000000e+00 : f32
    %77 = vector.shape_cast %42 : vector<4x1x1x1xi1> to vector<4x1x1x1xi1>
    %78 = vector.broadcast %77 : vector<4x1x1x1xi1> to vector<4x4x1x1xi1>
    %79 = vector.broadcast %cst_34 : f32 to vector<4x4x1x1xf32>
    %80 = arith.select %78, %79, %76 : vector<4x4x1x1xi1>, vector<4x4x1x1xf32>
    %81 = vector.extract_strided_slice %75 {offsets = [0, 0, 0, 14], sizes = [4, 4, 1, 1], strides = [1, 1, 1, 1]} : vector<4x4x1x16xf32> to vector<4x4x1x1xf32>
    %cst_35 = arith.constant 0.000000e+00 : f32
    %82 = vector.shape_cast %44 : vector<4x1x1x1xi1> to vector<4x1x1x1xi1>
    %83 = vector.broadcast %82 : vector<4x1x1x1xi1> to vector<4x4x1x1xi1>
    %84 = vector.broadcast %cst_35 : f32 to vector<4x4x1x1xf32>
    %85 = arith.select %83, %84, %81 : vector<4x4x1x1xi1>, vector<4x4x1x1xf32>
    %86 = tpu.concatenate %80, %75, %85 in 3 : vector<4x4x1x1xf32>, vector<4x4x1x16xf32>, vector<4x4x1x1xf32> -> vector<4x4x1x18xf32>
    %cst_36 = arith.constant 0.000000e+00 : f32
    %87 = vector.shape_cast %40 : vector<4x1x1x1xi1> to vector<4x1x1x1xi1>
    %88 = vector.broadcast %87 : vector<4x1x1x1xi1> to vector<4x4x1x18xi1>
    %89 = vector.broadcast %cst_36 : f32 to vector<4x4x1x18xf32>
    %90 = arith.select %88, %89, %86 : vector<4x4x1x18xi1>, vector<4x4x1x18xf32>
    %c0_37 = arith.constant 0 : index
    %c0_38 = arith.constant 0 : index
    %c17_39 = arith.constant 17 : index
    %c0_40 = arith.constant 0 : index
    %91 = vector.load %arg2[%c0_37, %c0_38, %c17_39, %c0_40] : memref<4x4x18x18xf32, #tpu.memory_space<vmem>>, vector<4x4x1x18xf32>
    tpu.vector_store %arg2[%c0_37, %c0_38, %c17_39, %c0_40], %90 {strides = array<i32>} : memref<4x4x18x18xf32, #tpu.memory_space<vmem>>, vector<4x4x1x18xf32>,
    return
  }
  func.func @transform_0(%arg0: i32) -> (i32, i32, i32, i32) {
    %c0_i32 = arith.constant 0 : i32
    %c0_i32_0 = arith.constant 0 : i32
    %c0_i32_1 = arith.constant 0 : i32
    %c0_i32_2 = arith.constant 0 : i32
    return %arg0, %c0_i32, %c0_i32_0, %c0_i32_1 : i32, i32, i32, i32
  }
  func.func @transform_1(%arg0: i32) -> (i32, i32, i32, i32) {
    %c0_i32 = arith.constant 0 : i32
    %c0_i32_0 = arith.constant 0 : i32
    %c0_i32_1 = arith.constant 0 : i32
    %c0_i32_2 = arith.constant 0 : i32
    return %arg0, %c0_i32, %c0_i32_0, %c0_i32_1 : i32, i32, i32, i32
  }
}

</mosaic_0001>

<bundles_post_ra>
// kernel: tpu_custom_call.1
= control target key start
LH: loop header
LB: loop body
LE: loop exit
PB: predicated region body
PF: predicated region fallthrough
CT: control target
= control target key end

     0   :  { %6 = vsyncpa [#allocation3], 0  ;;  %s2500_s0 = inlined_call_operand.hbm [shape: f32[8,4,16,16], index: 0, kind: input, shape index: {}]   ;;  %s2501_s1 = inlined_call_operand.vmem [shape: f32[8,4,18,18], index: 1, kind: output, shape index: {}]  }
   0x1   :  { %8 = vsyncpa [#allocation3 + $0x1], 0  ;;  %s1222_s6 = smov 0   ;;  %s1224_s7 = smov 0  }
   0x2   :  { %s1226_s8 = smov 0   ;;  %s1228_s9 = smov 0  }
   0x3 LB: > { %s1070_s10 = sadd.s32 4294967295, %s1204_s9   ;;  %s1242_s11 = sadd.s32 1, %s1204_s9   ;;  %s1204_s9 = sphi %s1228_s9, %s2548_s9   ;;  %s1200_s8 = sphi %s1226_s8, %s2547_s8   ;;  %s1196_s7 = sphi %s1224_s7, %s2546_s7   ;;  %s1192_s6 = sphi %s1222_s6, %s2545_s6  }
   0x4   : > { %s18_s12 = ssub.s32 %s1204_s9, %s1242_s11  ;;  %s21_s13 = sadd.s32 1, %s1200_s8 }
   0x5   : > { %p19_p0 = scmp.eq.s32.totalorder %s18_s12, 0  ;;  %p28_p1 = scmp.ne.s32.totalorder %s1200_s8, %s1196_s7 }
   0x6   : > { %p29_p2 = scmp.eq.s32.totalorder %s1204_s9, 0  ;;  %p34_p3 = scmp.ne.s32.totalorder %s1196_s7, %s1192_s6 }
   0x7   : > { %s1252_s14 = scalar_select %p19_p0, %s1200_s8, %s21_s13  }
   0x8   : > { %p30_p4 = por %p29_p2, %p28_p1  ;;  %p35_p5 = scmp.eq.s32.totalorder %s1070_s10, 0 }
   0x9   : > { %p1102_p6 = scmp.lt.s32.totalorder %s1204_s9, 2  ;;  %s84_s16 = sand.u32 1, %s1200_s8  }
   0xa   : > { %p1257_p7 = por %p35_p5, %p34_p3  ;;  %s1074_s17 = sshll.u32 %s84_s16, 8 }
   0xb   : > { %s1094_s18 = sshll.u32 %s1204_s9, 12  ;;  %s88_s22 = scalar_lea.vmem [#allocation2], %s1074_s17 }
   0xc   : > { %s1266_s21 = scalar_lea.hbm %s2500_s0, %s1094_s18  ;;  %s96_s23 = sshll.u32 %s88_s22, 4  ;;  %s1268_s23 = int_to_ptr.vmem [resolvable:$true] %s96_s23 }
   0xd   : > { %p1270_p8 = pnand %p1102_p6, %p30_p4  ;;  %s1275_s25 = scalar_lea.sflag [#allocation3], %s84_s16 }
   0xe   : > { %s1140_s26 = scalar_lea.hbm %s1266_s21, 4096  ;;  %s1145_s29 = scalar_lea.hbm %s2500_s0, 8192 }
   0xf   : > { %p1141_p10 = scmp.ne.s32.totalorder %s1266_s21, %s1140_s26  ;;  %p1142_p11 = pneg %p1270_p8 }
  0x10   : > { %p1146_p0 = scmp.lt.u32.totalorder %s1266_s21, %s2500_s0  ;;  %p1147_p1 = scmp.lt.u32.totalorder %s1145_s29, %s1140_s26 }
  0x11   : > { %p1143_p12 = pnand %p1142_p11, %p1141_p10  ;;  %p1149_p3 = scmp.lt.u32.totalorder %s1140_s26, %s1266_s21 }
  0x12   : > { %p1148_p2 = por %p1147_p1, %p1146_p0 }
  0x13   : > { %p1144_p13 = pneg %p1143_p12 }
  0x14   : > { %p1150_p4 = por %p1149_p3, %p1148_p2 }
  0x16   : > { %p1151_p5 = pnand %p1150_p4, %p1144_p13 }
  0x18   : > { %1154 = shalt.err (!%p1151_p5)
}
  0x19   : > { %s1155_s3 = scalar_lea.vmem %s1268_s23, 4096  ;;  %s1206_s4 = smov [#allocation2]  }
  0x1a   : > { %p1156_p6 = scmp.ne.s32.totalorder %s1268_s23, %s1155_s3  ;;  %s1160_s5 = sshll.u32 %s1206_s4, 4  ;;  %s1161_s5 = int_to_ptr.vmem [resolvable:$false] %s1160_s5 }
  0x1b   : > { %s1162_s6 = scalar_lea.vmem %s1161_s5, 8192  ;;  %p1163_p9 = scmp.lt.s32.totalorder %s1268_s23, %s1161_s5 }
  0x1c   : > { %p1158_p10 = pnand %p1156_p6, %p1142_p11  ;;  %p1164_p0 = scmp.lt.s32.totalorder %s1162_s6, %s1155_s3 }
  0x1e   : > { %p1159_p12 = pneg %p1158_p10  ;;  %p1165_p1 = por %p1164_p0, %p1163_p9 }
  0x20   : > { %p1166_p2 = pnand %p1165_p1, %p1159_p12 }
  0x22   : > { %1169 = shalt.err (!%p1166_p2)
}
  0x23   : > { %s1207_s12 = smov 128   ;;  %s1208_s13 = smov 8  }
  0x24   : > { %1101 = dma.hbm_to_vmem [thread:$0]  (!%p1270_p8), %s1266_s21, 4096, %s1268_s23, %s1275_s25, %s1207_s12, %s1207_s12, %s1208_s13  }
  0x25   : > { %p104_p11 = scmp.lt.s32.totalorder %s1204_s9, 3  ;;  %p2512_p13 = scmp.ge.s32.totalorder %s1204_s9, 1 }
  0x27   : > { %p105_p3 = pnand %p2512_p13, %p104_p11 }
  0x29   : > { %108 = sbr.rel (%p105_p3) target bundleno = 360 (0x168), region = 24 }
  0x30   : > { %s110_s16 = sand.u32 1, %s1196_s7  }
  0x31   : > { %s1079_s17 = sshll.u32 %s110_s16, 8  ;;  %s111_s18 = scalar_lea.sflag [#allocation3], %s110_s16 }
  0x32   : > { %s1307_s19 = scalar_lea.vmem [#allocation2], %s1079_s17 }
  0x33   : > { %1187 = dma.done.wait (%p1257_p7), %s111_s18, 4096  }
  0x34   : > { %1189 = vsyncadd (%p1257_p7), %s111_s18, 4294963200  ;;  %s1315_s20 = sshll.u32 %s1070_s10, 2  ;;  %v1333_v7 = vld [vmem:[%s1307_s19 + $0x10] sm:$0xff]  ;;  %v1336_v8 = vld [vmem:[%s1307_s19] sm:$0xff]  ;;  %s1209_s9 = smov 1  }
  0x35   : > { %v1318_v0 = vstv %s1315_s20  ;;  %327 = vrot.lane.b32.xlu1 %v1333_v7, %s1209_s9  ;;  %323 = vrot.lane.b32.xlu0 %v1336_v8, %s1209_s9  ;;  %v1348_v12 = vld [vmem:[%s1307_s19 + $0x18] sm:$0xff]  ;;  %s1210_s10 = smov 127   ;;  %p136_p7 = scmp.lt.s32.totalorder %s1315_s20, 7 }
  0x36   : > { %2513 = vst [vmem:[#allocation5_spill] sm:$0xff] %v1318_v0  ;;  %v180_v1 = vsub.s32 0, %v1318_v0  ;;  %v1322_v2 = vadd.s32 1, %v1318_v0  ;;  %vm179_vm0 = vcmp.lt.s32.totalorder %v1318_v0, 0  ;;  %v1345_v11 = vadd.s32 2, %v1318_v0  ;;  %v1351_v13 = vld [vmem:[%s1307_s19 + $0x8] sm:$0xff] }
  0x37   : > { %v1361_v17 = vld [vmem:[%s1307_s19 + $0x28] sm:$0xff]  ;;  %v1364_v18 = vld [vmem:[%s1307_s19 + $0x20] sm:$0xff]  ;;  %v1377_v22 = vld [vmem:[%s1307_s19 + $0x38] sm:$0xff]  ;;  %v1427_v35 = vadd.s32 3, %v1318_v0  ;;  %s2550_s20 = smov (!%p136_p7, %s1315_s20), 7  ;;  %s1211_s24 = smov 3  }
  0x38   : > { %2514 = vst [vmem:[#allocation6_spill] sm:$0xff] %v1322_v2  ;;  %v1325_v3 = vmin.u32 %v180_v1, %v1318_v0  ;;  %v187_v4 = vsub.s32 0, %v1322_v2  ;;  %2517 = vst [vmem:[#allocation9_spill] sm:$0xff] %v1345_v11  ;;  %v194_v16 = vsub.s32 0, %v1345_v11  ;;  %vm186_vm3 = vcmp.lt.s32.totalorder %v1322_v2, 0  ;;  %v1380_v23 = vld [vmem:[%s1307_s19 + $0x30] sm:$0xff] }
  0x39   : > { %329 = vrot.lane.b32.xlu1 %v1348_v12, %s1209_s9  ;;  %325 = vrot.lane.b32.xlu0 %v1351_v13, %s1209_s9  ;;  %v1391_v26 = vld [vmem:[%s1307_s19 + $0x48] sm:$0xff]  ;;  %v1394_v27 = vld [vmem:[%s1307_s19 + $0x40] sm:$0xff]  ;;  %vm193_vm9 = vcmp.lt.s32.totalorder %v1345_v11, 0  ;;  %2519 = vst [vmem:[#allocation11_spill] sm:$0xff] %v1427_v35  ;;  %v201_v43 = vsub.s32 0, %v1427_v35  ;;  %vm200_vm15 = vcmp.lt.s32.totalorder %v1427_v35, 0 }
  0x3a   : > { %2515 = vst [vmem:[#allocation7_spill] sm:$0xff] %v1325_v3  ;;  %v231_v5 = vand.u32 1, %v1325_v3  ;;  %v1330_v6 = vmin.u32 %v187_v4, %v1322_v2  ;;  %v1374_v21 = vmin.u32 %v194_v16, %v1345_v11  ;;  %v1430_v36 = vld [vmem:[%s1307_s19 + $0x58] sm:$0xff]  ;;  %v1433_v37 = vld [vmem:[%s1307_s19 + $0x50] sm:$0xff]  ;;  %v1461_v44 = vld [vmem:[%s1307_s19 + $0x68] sm:$0xff]  ;;  %s1095_s15 = smul.u32 96, %s2550_s20 }
  0x3b   : > { %v1464_v45 = vld [vmem:[%s1307_s19 + $0x60] sm:$0xff]  ;;  %v1501_v52 = vmin.u32 %v201_v43, %v1427_v35  ;;  %v1504_v53 = vld [vmem:[%s1307_s19 + $0x78] sm:$0xff]  ;;  %v1507_v54 = vld [vmem:[%s1307_s19 + $0x70] sm:$0xff] }
  0x3c   : > { %2516 = vst [vmem:[#allocation8_spill] sm:$0xff] %v1330_v6  ;;  %v232_v9 = vsub.s32 0, %v231_v5  ;;  %v238_v10 = vand.u32 1, %v1330_v6  ;;  %2518 = vst [vmem:[#allocation10_spill] sm:$0xff] %v1374_v21  ;;  %v245_v25 = vand.u32 1, %v1374_v21  ;;  %v1525_v59 = vld [vmem:[%s1307_s19 + $0x88] sm:$0xff]  ;;  %s1804_s23 = scalar_lea.vmem %s2501_s1, %s1095_s15 }
  0x3d   : > { %333 = vrot.lane.b32.xlu1 %v1361_v17, %s1209_s9  ;;  %331 = vrot.lane.b32.xlu0 %v1364_v18, %s1209_s9  ;;  %2520 = vst [vmem:[#allocation12_spill] sm:$0xff] %v1501_v52  ;;  %v252_v58 = vand.u32 1, %v1501_v52  ;;  %v1528_v60 = vld [vmem:[%s1307_s19 + $0x80] sm:$0xff]  ;;  %v1548_v4 = vld [vmem:[%s1307_s19 + $0x98] sm:$0xff] }
  0x3e   : > { %v233_v14 = vsel %vm179_vm0, %v232_v9, %v231_v5  ;;  %v239_v15 = vsub.s32 0, %v238_v10  ;;  %v246_v34 = vsub.s32 0, %v245_v25  ;;  %v1551_v5 = vld [vmem:[%s1307_s19 + $0x90] sm:$0xff]  ;;  %v1574_v16 = vld [vmem:[%s1307_s19 + $0xa0] sm:$0xff]  ;;  %v1654_v2 = vld [vmem:[%s1307_s19 + $0xe8] sm:$0xff] }
  0x3f   : > { %vm255_vm1 = vcmp.ne.s32.totalorder %v233_v14, 0  ;;  %vm259_vm2 = vcmp.lt.s32.totalorder %v233_v14, 0  ;;  %v267_v19 = vadd.s32 2, %v233_v14  ;;  %v253_v1 = vsub.s32 0, %v252_v58  ;;  %v1657_v6 = vld [vmem:[%s1307_s19 + $0xe0] sm:$0xff] }
  0x40   : > { %vm263_vm4 = vmand %vm259_vm2, %vm255_vm1  ;;  %v240_v20 = vsel %vm186_vm3, %v239_v15, %v238_v10  ;;  %v247_v42 = vsel %vm193_vm9, %v246_v34, %v245_v25  ;;  %v1571_v15 = vld [vmem:[%s1307_s19 + $0xa8] sm:$0xff]  ;;  %v1591_v25 = vld [vmem:[%s1307_s19 + $0xb8] sm:$0xff] }
  0x41   : > { %v1382_v24 = vsel %vm263_vm4, %v267_v19, %v233_v14  ;;  %vm256_vm6 = vcmp.ne.s32.totalorder %v240_v20, 0  ;;  %vm260_vm7 = vcmp.lt.s32.totalorder %v240_v20, 0  ;;  %337 = vrot.lane.b32.xlu1 %v1377_v22, %s1209_s9  ;;  %335 = vrot.lane.b32.xlu0 %v1380_v23, %s1209_s9  ;;  %v268_v28 = vadd.s32 2, %v240_v20 }
  0x42   : > { %vm287_vm5 = vcmp.eq.s32.totalorder %v1382_v24, 1  ;;  %vm264_vm8 = vmand %vm260_vm7, %vm256_vm6  ;;  %vm257_vm11 = vcmp.ne.s32.totalorder %v247_v42, 0  ;;  %vm261_vm12 = vcmp.lt.s32.totalorder %v247_v42, 0  ;;  %v269_v55 = vadd.s32 2, %v247_v42 }
  0x43   : > { %v1399_v29 = vsel %vm287_vm5, 0.0, %v1351_v13  ;;  %v1404_v30 = vsel %vm287_vm5, 0.0, %v1336_v8  ;;  %v1409_v31 = vsel %vm287_vm5, 0.0, %v1348_v12  ;;  %v1414_v32 = vsel %vm287_vm5, 0.0, %v1333_v7  ;;  %vm265_vm13 = vmand %vm261_vm12, %vm257_vm11 }
  0x44   : > { %v1419_v33 = vsel %vm287_vm5, 0.0, %v1361_v17  ;;  %v1435_v38 = vsel %vm264_vm8, %v268_v28, %v240_v20  ;;  %v1440_v39 = vsel %vm287_vm5, 0.0, %v1364_v18  ;;  %v1445_v40 = vsel %vm287_vm5, 0.0, %v1377_v22  ;;  %v1594_v28 = vld [vmem:[%s1307_s19 + $0xb0] sm:$0xff] }
  0x45   : > { %341 = vrot.lane.b32.xlu1 %v1391_v26, %s1209_s9  ;;  %339 = vrot.lane.b32.xlu0 %v1394_v27, %s1209_s9  ;;  %v1450_v41 = vsel %vm287_vm5, 0.0, %v1380_v23  ;;  %vm288_vm10 = vcmp.eq.s32.totalorder %v1435_v38, 1  ;;  %v1530_v61 = vsel %vm265_vm13, %v269_v55, %v247_v42  ;;  %v254_v14 = vsel %vm200_vm15, %v253_v1, %v252_v58  ;;  %v1611_v55 = vld [vmem:[%s1307_s19 + $0xc8] sm:$0xff]  ;;  %v1614_v58 = vld [vmem:[%s1307_s19 + $0xc0] sm:$0xff] }
  0x46   : > { %v1469_v46 = vsel %vm288_vm10, 0.0, %v1391_v26  ;;  %v1474_v47 = vsel %vm288_vm10, 0.0, %v1394_v27  ;;  %v1479_v48 = vsel %vm288_vm10, 0.0, %v1430_v36  ;;  %v1484_v49 = vsel %vm288_vm10, 0.0, %v1433_v37 }
  0x47   : > { %v1489_v50 = vsel %vm288_vm10, 0.0, %v1461_v44  ;;  %v1494_v51 = vsel %vm288_vm10, 0.0, %v1464_v45  ;;  %v1512_v56 = vsel %vm288_vm10, 0.0, %v1504_v53  ;;  %v1517_v57 = vsel %vm288_vm10, 0.0, %v1507_v54 }
  0x48   : > { %vm289_vm14 = vcmp.eq.s32.totalorder %v1530_v61, 1  ;;  %vm258_vm1 = vcmp.ne.s32.totalorder %v254_v14, 0  ;;  %vm262_vm2 = vcmp.lt.s32.totalorder %v254_v14, 0  ;;  %v270_v34 = vadd.s32 2, %v254_v14 }
  0x49   : > { %345 = vrot.lane.b32.xlu1 %v1430_v36, %s1209_s9  ;;  %343 = vrot.lane.b32.xlu0 %v1433_v37, %s1209_s9  ;;  %v1536_v62 = vsel %vm289_vm14, 0.0, %v1525_v59  ;;  %v1541_v63 = vsel %vm289_vm14, 0.0, %v1528_v60  ;;  %v1557_v9 = vsel %vm289_vm14, 0.0, %v1548_v4  ;;  %v1562_v10 = vsel %vm289_vm14, 0.0, %v1551_v5  ;;  %vm266_vm4 = vmand %vm262_vm2, %vm258_vm1 }
  0x4a   : > { %v1579_v19 = vsel %vm289_vm14, 0.0, %v1571_v15  ;;  %v1584_v20 = vsel %vm289_vm14, 0.0, %v1574_v16  ;;  %v1599_v42 = vsel %vm289_vm14, 0.0, %v1591_v25  ;;  %v1604_v43 = vsel %vm289_vm14, 0.0, %v1594_v28 }
  0x4b   : > { %v1616_v1 = vsel %vm266_vm4, %v270_v34, %v254_v14  ;;  %v1634_v14 = vld [vmem:[%s1307_s19 + $0xd8] sm:$0xff]  ;;  %v1637_v34 = vld [vmem:[%s1307_s19 + $0xd0] sm:$0xff]  ;;  %vm283_vm6 = vcmp.eq.s32.totalorder %v1382_v24, 0  ;;  %vm284_vm7 = vcmp.eq.s32.totalorder %v1435_v38, 0  ;;  %vm285_vm8 = vcmp.eq.s32.totalorder %v1530_v61, 0 }
  0x4c   : > { %vm290_vm5 = vcmp.eq.s32.totalorder %v1616_v1, 1  ;;  %v475_v24 = vsel %vm284_vm7, 0.0, %v1504_v53  ;;  %v481_v38 = vsel %vm285_vm8, 0.0, %v1571_v15  ;;  %vm286_vm10 = vcmp.eq.s32.totalorder %v1616_v1, 0 }
  0x4d   : > { %349 = vrot.lane.b32.xlu1 %v1461_v44, %s1209_s9  ;;  %347 = vrot.lane.b32.xlu0 %v1464_v45, %s1209_s9  ;;  %v1622_v35 = vsel %vm290_vm5, 0.0, %v1611_v55  ;;  %v1627_v52 = vsel %vm290_vm5, 0.0, %v1614_v58  ;;  %v1642_v11 = vsel %vm290_vm5, 0.0, %v1634_v14  ;;  %v1647_v21 = vsel %vm290_vm5, 0.0, %v1637_v34 }
  0x4e   : > { %2521 = vst [vmem:[#allocation13_spill] sm:$0xff] %v1622_v35  ;;  %2522 = vst [vmem:[#allocation14_spill] sm:$0xff] %v1627_v52  ;;  %v1662_v0 = vsel %vm290_vm5, 0.0, %v1654_v2  ;;  %v1667_v3 = vsel %vm290_vm5, 0.0, %v1657_v6  ;;  %v461_v52 = vsel %vm283_vm6, 0.0, %v1351_v13  ;;  %v460_v35 = vsel %vm283_vm6, 0.0, %v1336_v8 }
  0x4f   : > { %2523 = vst [vmem:[#allocation15_spill] sm:$0xff] %v1642_v11  ;;  %2524 = vst [vmem:[#allocation16_spill] sm:$0xff] %v1647_v21  ;;  %v1674_v21 = vld [vmem:[%s1307_s19 + $0xf8] sm:$0xff]  ;;  %v1677_v11 = vld [vmem:[%s1307_s19 + $0xf0] sm:$0xff]  ;;  %v465_v8 = vsel %vm283_vm6, 0.0, %v1361_v17  ;;  %v464_v13 = vsel %vm283_vm6, 0.0, %v1364_v18 }
  0x50   : > { %2525 = vst [vmem:[#allocation17_spill] sm:$0xff] %v1662_v0  ;;  %2526 = vst [vmem:[#allocation18_spill] sm:$0xff] %v1667_v3  ;;  %v1683_v0 = vsel %vm290_vm5, 0.0, %v1674_v21  ;;  %v1688_v3 = vsel %vm290_vm5, 0.0, %v1677_v11  ;;  %v471_v17 = vsel %vm284_vm7, 0.0, %v1430_v36  ;;  %v470_v18 = vsel %vm284_vm7, 0.0, %v1433_v37 }
  0x51   : > { %353 = vrot.lane.b32.xlu1 %v1504_v53, %s1209_s9  ;;  %351 = vrot.lane.b32.xlu0 %v1507_v54, %s1209_s9  ;;  %2527 = vst [vmem:[#allocation19_spill] sm:$0xff] %v1683_v0  ;;  %2528 = vst [vmem:[#allocation20_spill] sm:$0xff] %v1688_v3  ;;  %v463_v3 = vsel %vm283_vm6, 0.0, %v1348_v12  ;;  %v462_v0 = vsel %vm283_vm6, 0.0, %v1333_v7  ;;  %v467_v7 = vsel %vm283_vm6, 0.0, %v1377_v22  ;;  %v468_v12 = vsel %vm284_vm7, 0.0, %v1394_v27 }
  0x52   : > { %v473_v22 = vsel %vm284_vm7, 0.0, %v1461_v44  ;;  %v477_v27 = vsel %vm285_vm8, 0.0, %v1525_v59  ;;  %v479_v36 = vsel %vm285_vm8, 0.0, %v1548_v4  ;;  %v478_v37 = vsel %vm285_vm8, 0.0, %v1551_v5 }
  0x53   : > { %v480_v44 = vsel %vm285_vm8, 0.0, %v1574_v16  ;;  %v485_v53 = vsel %vm286_vm10, 0.0, %v1611_v55  ;;  %vm419_vm11 = vcmask 138248   ;;  %vm620_vm12 = vcmask 7168  }
  0x54   : > { %vm821_vm1 = vcmask 146568   ;;  %vm870_vm2 = vcmask 138240  }
  0x55   : > { %357 = vrot.lane.b32.xlu1 %v1525_v59, %s1209_s9  ;;  %355 = vrot.lane.b32.xlu0 %v1528_v60, %s1209_s9  ;;  %v487_v59 = vsel %vm286_vm10, 0.0, %v1634_v14 }
  0x59   : > { %361 = vrot.lane.b32.xlu1 %v1548_v4, %s1209_s9  ;;  %359 = vrot.lane.b32.xlu0 %v1551_v5, %s1209_s9  ;;  %v489_v5 = vsel %vm286_vm10, 0.0, %v1654_v2 }
  0x5d   : > { %365 = vrot.lane.b32.xlu1 %v1571_v15, %s1209_s9  ;;  %363 = vrot.lane.b32.xlu0 %v1574_v16, %s1209_s9  ;;  %v488_v15 = vsel %vm286_vm10, 0.0, %v1657_v6 }
  0x61   : > { %369 = vrot.lane.b32.xlu1 %v1591_v25, %s1209_s9  ;;  %367 = vrot.lane.b32.xlu0 %v1594_v28, %s1209_s9 }
  0x65   : > { %373 = vrot.lane.b32.xlu1 %v1611_v55, %s1209_s9  ;;  %371 = vrot.lane.b32.xlu0 %v1614_v58, %s1209_s9 }
  0x69   : > { %377 = vrot.lane.b32.xlu1 %v1634_v14, %s1209_s9  ;;  %375 = vrot.lane.b32.xlu0 %v1637_v34, %s1209_s9  ;;  %v2529_v14 = vld [vmem:[#allocation13_spill] sm:$0xff] }
  0x6d   : > { %381 = vrot.lane.b32.xlu1 %v1654_v2, %s1209_s9  ;;  %379 = vrot.lane.b32.xlu0 %v1657_v6, %s1209_s9  ;;  %v491_v2 = vsel %vm286_vm10, 0.0, %v1674_v21  ;;  %v490_v6 = vsel %vm286_vm10, 0.0, %v1677_v11 }
  0x71   : > { %385 = vrot.lane.b32.xlu1 %v1674_v21, %s1209_s9  ;;  %383 = vrot.lane.b32.xlu0 %v1677_v11, %s1209_s9 }
  0x75   : > { %526 = vrot.lane.b32.xlu1 %v461_v52, %s1210_s10  ;;  %524 = vrot.lane.b32.xlu0 %v460_v35, %s1210_s10  ;;  %v476_v35 = vsel %vm285_vm8, 0.0, %v1528_v60  ;;  %v482_v52 = vsel %vm285_vm8, 0.0, %v1594_v28  ;;  %v486_v60 = vsel %vm286_vm10, 0.0, %v1637_v34 }
  0x79   : > { %530 = vrot.lane.b32.xlu1 %v463_v3, %s1210_s10  ;;  %528 = vrot.lane.b32.xlu0 %v462_v0, %s1210_s10  ;;  %v466_v0 = vsel %vm283_vm6, 0.0, %v1380_v23  ;;  %v469_v3 = vsel %vm284_vm7, 0.0, %v1391_v26  ;;  %v472_v23 = vsel %vm284_vm7, 0.0, %v1464_v45  ;;  %v474_v26 = vsel %vm284_vm7, 0.0, %v1507_v54 }
  0x7a   : > { %v483_v45 = vsel %vm285_vm8, 0.0, %v1591_v25  ;;  %v484_v54 = vsel %vm286_vm10, 0.0, %v1614_v58  ;;  %vm984_vm6 = vcmask 145414   ;;  %vm911_vm7 = vcmask 140289  }
  0x7d   : > { %534 = vrot.lane.b32.xlu1 %v465_v8, %s1210_s10  ;;  %532 = vrot.lane.b32.xlu0 %v464_v13, %s1210_s10  ;;  %v2531_v8 = vld [vmem:[#allocation15_spill] sm:$0xff]  ;;  %v2532_v13 = vld [vmem:[#allocation16_spill] sm:$0xff] }
  0x81   : > { %538 = vrot.lane.b32.xlu1 %v467_v7, %s1210_s10  ;;  %536 = vrot.lane.b32.xlu0 %v466_v0, %s1210_s10 }
  0x85   : > { %542 = vrot.lane.b32.xlu1 %v469_v3, %s1210_s10  ;;  %540 = vrot.lane.b32.xlu0 %v468_v12, %s1210_s10  ;;  %v2533_v12 = vld [vmem:[#allocation17_spill] sm:$0xff] }
  0x89   : > { %546 = vrot.lane.b32.xlu1 %v471_v17, %s1210_s10  ;;  %544 = vrot.lane.b32.xlu0 %v470_v18, %s1210_s10  ;;  %v2534_v17 = vld [vmem:[#allocation18_spill] sm:$0xff] }
  0x8d   : > { %550 = vrot.lane.b32.xlu1 %v473_v22, %s1210_s10  ;;  %548 = vrot.lane.b32.xlu0 %v472_v23, %s1210_s10 }
  0x91   : > { %554 = vrot.lane.b32.xlu1 %v475_v24, %s1210_s10  ;;  %552 = vrot.lane.b32.xlu0 %v474_v26, %s1210_s10  ;;  %v2535_v26 = vld [vmem:[#allocation19_spill] sm:$0xff] }
  0x95   : > { %558 = vrot.lane.b32.xlu1 %v477_v27, %s1210_s10  ;;  %556 = vrot.lane.b32.xlu0 %v476_v35, %s1210_s10  ;;  %v2536_v27 = vld [vmem:[#allocation20_spill] sm:$0xff] }
  0x99   : > { %562 = vrot.lane.b32.xlu1 %v479_v36, %s1210_s10  ;;  %560 = vrot.lane.b32.xlu0 %v478_v37, %s1210_s10 }
  0x9d   : > { %566 = vrot.lane.b32.xlu1 %v481_v38, %s1210_s10  ;;  %564 = vrot.lane.b32.xlu0 %v480_v44, %s1210_s10 }
  0xa1   : > { %570 = vrot.lane.b32.xlu1 %v483_v45, %s1210_s10  ;;  %568 = vrot.lane.b32.xlu0 %v482_v52, %s1210_s10 }
  0xa5   : > { %574 = vrot.lane.b32.xlu1 %v485_v53, %s1210_s10  ;;  %572 = vrot.lane.b32.xlu0 %v484_v54, %s1210_s10 }
  0xa7   : > { %v1814_v61 = vpop.permute.xlu1 %327  ;;  %v1816_v4 = vpop.permute.xlu0 %323 }
  0xa8   : > { %422 = vst.msk [vmem:[%s1804_s23 + $0x19] sm:$0xff] %vm419_vm11, %v1814_v61  ;;  %420 = vst.msk [vmem:[%s1804_s23 + $0x1] sm:$0xff] %vm419_vm11, %v1816_v4 }
  0xa9   : > { %578 = vrot.lane.b32.xlu1 %v487_v59, %s1210_s10  ;;  %576 = vrot.lane.b32.xlu0 %v486_v60, %s1210_s10 }
  0xab   : > { %v1832_v16 = vpop.permute.xlu1 %329  ;;  %v1834_v25 = vpop.permute.xlu0 %325 }
  0xac   : > { %423 = vst.msk [vmem:[%s1804_s23 + $0x21] sm:$0xff] %vm419_vm11, %v1832_v16  ;;  %421 = vst.msk [vmem:[%s1804_s23 + $0x9] sm:$0xff] %vm419_vm11, %v1834_v25 }
  0xad   : > { %582 = vrot.lane.b32.xlu1 %v489_v5, %s1210_s10  ;;  %580 = vrot.lane.b32.xlu0 %v488_v15, %s1210_s10 }
  0xaf   : > { %v1850_v28 = vpop.permute.xlu1 %333  ;;  %v1852_v55 = vpop.permute.xlu0 %331 }
  0xb0   : > { %425 = vst.msk [vmem:[%s1804_s23 + $0x39] sm:$0xff] %vm419_vm11, %v1850_v28  ;;  %424 = vst.msk [vmem:[%s1804_s23 + $0x31] sm:$0xff] %vm419_vm11, %v1852_v55 }
  0xb1   : > { %586 = vrot.lane.b32.xlu1 %v491_v2, %s1210_s10  ;;  %584 = vrot.lane.b32.xlu0 %v490_v6, %s1210_s10 }
  0xb3   : > { %v1862_v21 = vpop.permute.xlu1 %337  ;;  %v1864_v11 = vpop.permute.xlu0 %335 }
  0xb4   : > { %427 = vst.msk [vmem:[%s1804_s23 + $0x51] sm:$0xff] %vm419_vm11, %v1862_v21  ;;  %426 = vst.msk [vmem:[%s1804_s23 + $0x49] sm:$0xff] %vm419_vm11, %v1864_v11 }
  0xb5   : > { %727 = vrot.lane.b32.xlu1 %v1399_v29, %s1211_s24  ;;  %725 = vrot.lane.b32.xlu0 %v1404_v30, %s1211_s24 }
  0xb7   : > { %v1876_v58 = vpop.permute.xlu1 %341  ;;  %v1878_v1 = vpop.permute.xlu0 %339 }
  0xb8   : > { %429 = vst.msk [vmem:[%s1804_s23 + $0x69] sm:$0xff] %vm419_vm11, %v1876_v58  ;;  %428 = vst.msk [vmem:[%s1804_s23 + $0x61] sm:$0xff] %vm419_vm11, %v1878_v1 }
  0xb9   : > { %731 = vrot.lane.b32.xlu1 %v1409_v31, %s1211_s24  ;;  %729 = vrot.lane.b32.xlu0 %v1414_v32, %s1211_s24 }
  0xbb   : > { %v1890_v29 = vpop.permute.xlu1 %345  ;;  %v1892_v30 = vpop.permute.xlu0 %343 }
  0xbc   : > { %431 = vst.msk [vmem:[%s1804_s23 + $0x81] sm:$0xff] %vm419_vm11, %v1890_v29  ;;  %430 = vst.msk [vmem:[%s1804_s23 + $0x79] sm:$0xff] %vm419_vm11, %v1892_v30 }
  0xbd   : > { %735 = vrot.lane.b32.xlu1 %v1419_v33, %s1211_s24  ;;  %733 = vrot.lane.b32.xlu0 %v1440_v39, %s1211_s24 }
  0xbf   : > { %v1904_v31 = vpop.permute.xlu1 %349  ;;  %v1906_v32 = vpop.permute.xlu0 %347 }
  0xc0   : > { %433 = vst.msk [vmem:[%s1804_s23 + $0x99] sm:$0xff] %vm419_vm11, %v1904_v31  ;;  %432 = vst.msk [vmem:[%s1804_s23 + $0x91] sm:$0xff] %vm419_vm11, %v1906_v32 }
  0xc1   : > { %739 = vrot.lane.b32.xlu1 %v1445_v40, %s1211_s24  ;;  %737 = vrot.lane.b32.xlu0 %v1450_v41, %s1211_s24 }
  0xc3   : > { %v1918_v33 = vpop.permute.xlu1 %353  ;;  %v1920_v39 = vpop.permute.xlu0 %351 }
  0xc4   : > { %435 = vst.msk [vmem:[%s1804_s23 + $0xb1] sm:$0xff] %vm419_vm11, %v1918_v33  ;;  %434 = vst.msk [vmem:[%s1804_s23 + $0xa9] sm:$0xff] %vm419_vm11, %v1920_v39 }
  0xc5   : > { %743 = vrot.lane.b32.xlu1 %v1469_v46, %s1211_s24  ;;  %741 = vrot.lane.b32.xlu0 %v1474_v47, %s1211_s24 }
  0xc7   : > { %v1932_v40 = vpop.permute.xlu1 %357  ;;  %v1934_v41 = vpop.permute.xlu0 %355 }
  0xc8   : > { %437 = vst.msk [vmem:[%s1804_s23 + $0xc9] sm:$0xff] %vm419_vm11, %v1932_v40  ;;  %436 = vst.msk [vmem:[%s1804_s23 + $0xc1] sm:$0xff] %vm419_vm11, %v1934_v41 }
  0xc9   : > { %747 = vrot.lane.b32.xlu1 %v1479_v48, %s1211_s24  ;;  %745 = vrot.lane.b32.xlu0 %v1484_v49, %s1211_s24 }
  0xcb   : > { %v1946_v46 = vpop.permute.xlu1 %361  ;;  %v1948_v47 = vpop.permute.xlu0 %359 }
  0xcc   : > { %439 = vst.msk [vmem:[%s1804_s23 + $0xe1] sm:$0xff] %vm419_vm11, %v1946_v46  ;;  %438 = vst.msk [vmem:[%s1804_s23 + $0xd9] sm:$0xff] %vm419_vm11, %v1948_v47 }
  0xcd   : > { %751 = vrot.lane.b32.xlu1 %v1489_v50, %s1211_s24  ;;  %749 = vrot.lane.b32.xlu0 %v1494_v51, %s1211_s24 }
  0xcf   : > { %v1960_v48 = vpop.permute.xlu1 %365  ;;  %v1962_v49 = vpop.permute.xlu0 %363 }
  0xd0   : > { %441 = vst.msk [vmem:[%s1804_s23 + $0xf9] sm:$0xff] %vm419_vm11, %v1960_v48  ;;  %440 = vst.msk [vmem:[%s1804_s23 + $0xf1] sm:$0xff] %vm419_vm11, %v1962_v49 }
  0xd1   : > { %755 = vrot.lane.b32.xlu1 %v1512_v56, %s1211_s24  ;;  %753 = vrot.lane.b32.xlu0 %v1517_v57, %s1211_s24 }
  0xd3   : > { %v1974_v50 = vpop.permute.xlu1 %369  ;;  %v1976_v51 = vpop.permute.xlu0 %367 }
  0xd4   : > { %443 = vst.msk [vmem:[%s1804_s23 + $0x111] sm:$0xff] %vm419_vm11, %v1974_v50  ;;  %442 = vst.msk [vmem:[%s1804_s23 + $0x109] sm:$0xff] %vm419_vm11, %v1976_v51 }
  0xd5   : > { %759 = vrot.lane.b32.xlu1 %v1536_v62, %s1211_s24  ;;  %757 = vrot.lane.b32.xlu0 %v1541_v63, %s1211_s24 }
  0xd7   : > { %v1988_v56 = vpop.permute.xlu1 %373  ;;  %v1990_v57 = vpop.permute.xlu0 %371 }
  0xd8   : > { %445 = vst.msk [vmem:[%s1804_s23 + $0x129] sm:$0xff] %vm419_vm11, %v1988_v56  ;;  %444 = vst.msk [vmem:[%s1804_s23 + $0x121] sm:$0xff] %vm419_vm11, %v1990_v57 }
  0xd9   : > { %763 = vrot.lane.b32.xlu1 %v1557_v9, %s1211_s24  ;;  %761 = vrot.lane.b32.xlu0 %v1562_v10, %s1211_s24 }
  0xdb   : > { %v2002_v62 = vpop.permute.xlu1 %377  ;;  %v2004_v63 = vpop.permute.xlu0 %375 }
  0xdc   : > { %447 = vst.msk [vmem:[%s1804_s23 + $0x141] sm:$0xff] %vm419_vm11, %v2002_v62  ;;  %446 = vst.msk [vmem:[%s1804_s23 + $0x139] sm:$0xff] %vm419_vm11, %v2004_v63 }
  0xdd   : > { %767 = vrot.lane.b32.xlu1 %v1579_v19, %s1211_s24  ;;  %765 = vrot.lane.b32.xlu0 %v1584_v20, %s1211_s24 }
  0xdf   : > { %v2016_v9 = vpop.permute.xlu1 %381  ;;  %v2018_v10 = vpop.permute.xlu0 %379 }
  0xe0   : > { %449 = vst.msk [vmem:[%s1804_s23 + $0x159] sm:$0xff] %vm419_vm11, %v2016_v9  ;;  %448 = vst.msk [vmem:[%s1804_s23 + $0x151] sm:$0xff] %vm419_vm11, %v2018_v10 }
  0xe1   : > { %771 = vrot.lane.b32.xlu1 %v1599_v42, %s1211_s24  ;;  %769 = vrot.lane.b32.xlu0 %v1604_v43, %s1211_s24  ;;  %v2530_v42 = vld [vmem:[#allocation14_spill] sm:$0xff] }
  0xe3   : > { %v2030_v19 = vpop.permute.xlu1 %385  ;;  %v2032_v20 = vpop.permute.xlu0 %383 }
  0xe4   : > { %451 = vst.msk [vmem:[%s1804_s23 + $0x171] sm:$0xff] %vm419_vm11, %v2030_v19  ;;  %450 = vst.msk [vmem:[%s1804_s23 + $0x169] sm:$0xff] %vm419_vm11, %v2032_v20 }
  0xe5   : > { %775 = vrot.lane.b32.xlu1 %v2529_v14, %s1211_s24  ;;  %773 = vrot.lane.b32.xlu0 %v2530_v42, %s1211_s24  ;;  %v2537_v42 = vld [vmem:[#allocation7_spill] sm:$0xff] }
  0xe7   : > { %v2044_v43 = vpop.permute.xlu1 %526  ;;  %v2046_v34 = vpop.permute.xlu0 %524 }
  0xe8   : > { %622 = vst.msk [vmem:[%s1804_s23 + $0x9] sm:$0xff] %vm620_vm12, %v2044_v43  ;;  %621 = vst.msk [vmem:[%s1804_s23 + $0x1] sm:$0xff] %vm620_vm12, %v2046_v34 }
  0xe9   : > { %779 = vrot.lane.b32.xlu1 %v2531_v8, %s1211_s24  ;;  %777 = vrot.lane.b32.xlu0 %v2532_v13, %s1211_s24  ;;  %v183_v8 = vand.u32 3, %v2537_v42 }
  0xeb   : > { %v531_v7 = vpop.permute.xlu1 %530  ;;  %v2058_v0 = vpop.permute.xlu0 %528 }
  0xec   : > { %624 = vst.msk [vmem:[%s1804_s23 + $0x21] sm:$0xff] %vm620_vm12, %v531_v7  ;;  %v2064_v3 = vsel %vm620_vm12, %v531_v7, %v1832_v16  ;;  %623 = vst.msk [vmem:[%s1804_s23 + $0x19] sm:$0xff] %vm620_vm12, %v2058_v0 }
  0xed   : > { %783 = vrot.lane.b32.xlu1 %v2533_v12, %s1211_s24  ;;  %781 = vrot.lane.b32.xlu0 %v2534_v17, %s1211_s24 }
  0xef   : > { %v535_v18 = vpop.permute.xlu1 %534  ;;  %v533_v22 = vpop.permute.xlu0 %532 }
  0xf0   : > { %626 = vst.msk [vmem:[%s1804_s23 + $0x39] sm:$0xff] %vm620_vm12, %v535_v18  ;;  %v2077_v23 = vsel %vm620_vm12, %v535_v18, %v1850_v28  ;;  %625 = vst.msk [vmem:[%s1804_s23 + $0x31] sm:$0xff] %vm620_vm12, %v533_v22  ;;  %v2083_v24 = vsel %vm620_vm12, %v533_v22, %v1852_v55 }
  0xf1   : > { %787 = vrot.lane.b32.xlu1 %v2535_v26, %s1211_s24  ;;  %785 = vrot.lane.b32.xlu0 %v2536_v27, %s1211_s24 }
  0xf3   : > { %v539_v35 = vpop.permute.xlu1 %538  ;;  %v537_v36 = vpop.permute.xlu0 %536 }
  0xf4   : > { %628 = vst.msk [vmem:[%s1804_s23 + $0x51] sm:$0xff] %vm620_vm12, %v539_v35  ;;  %v2093_v37 = vsel %vm620_vm12, %v539_v35, %v1862_v21  ;;  %627 = vst.msk [vmem:[%s1804_s23 + $0x49] sm:$0xff] %vm620_vm12, %v537_v36  ;;  %v2099_v38 = vsel %vm620_vm12, %v537_v36, %v1864_v11 }
  0xf7   : > { %v543_v44 = vpop.permute.xlu1 %542  ;;  %v541_v45 = vpop.permute.xlu0 %540 }
  0xf8   : > { %630 = vst.msk [vmem:[%s1804_s23 + $0x69] sm:$0xff] %vm620_vm12, %v543_v44  ;;  %v2105_v52 = vsel %vm620_vm12, %v543_v44, %v1876_v58  ;;  %629 = vst.msk [vmem:[%s1804_s23 + $0x61] sm:$0xff] %vm620_vm12, %v541_v45  ;;  %v2111_v53 = vsel %vm620_vm12, %v541_v45, %v1878_v1 }
  0xfb   : > { %v547_v54 = vpop.permute.xlu1 %546  ;;  %v545_v59 = vpop.permute.xlu0 %544 }
  0xfc   : > { %632 = vst.msk [vmem:[%s1804_s23 + $0x81] sm:$0xff] %vm620_vm12, %v547_v54  ;;  %v2117_v60 = vsel %vm620_vm12, %v547_v54, %v1890_v29  ;;  %631 = vst.msk [vmem:[%s1804_s23 + $0x79] sm:$0xff] %vm620_vm12, %v545_v59  ;;  %v2123_v5 = vsel %vm620_vm12, %v545_v59, %v1892_v30 }
  0xff   : > { %v551_v15 = vpop.permute.xlu1 %550  ;;  %v549_v16 = vpop.permute.xlu0 %548 }
 0x100   : > { %634 = vst.msk [vmem:[%s1804_s23 + $0x99] sm:$0xff] %vm620_vm12, %v551_v15  ;;  %v2129_v2 = vsel %vm620_vm12, %v551_v15, %v1904_v31  ;;  %633 = vst.msk [vmem:[%s1804_s23 + $0x91] sm:$0xff] %vm620_vm12, %v549_v16  ;;  %v2135_v6 = vsel %vm620_vm12, %v549_v16, %v1906_v32 }
 0x103   : > { %v555_v28 = vpop.permute.xlu1 %554  ;;  %v553_v55 = vpop.permute.xlu0 %552 }
 0x104   : > { %636 = vst.msk [vmem:[%s1804_s23 + $0xb1] sm:$0xff] %vm620_vm12, %v555_v28  ;;  %v2141_v21 = vsel %vm620_vm12, %v555_v28, %v1918_v33  ;;  %635 = vst.msk [vmem:[%s1804_s23 + $0xa9] sm:$0xff] %vm620_vm12, %v553_v55  ;;  %v2147_v11 = vsel %vm620_vm12, %v553_v55, %v1920_v39  ;;  %v928_v55 = vsel %vm620_vm12, %v2044_v43, %v1834_v25 }
 0x107   : > { %v559_v58 = vpop.permute.xlu1 %558  ;;  %v557_v1 = vpop.permute.xlu0 %556 }
 0x108   : > { %638 = vst.msk [vmem:[%s1804_s23 + $0xc9] sm:$0xff] %vm620_vm12, %v559_v58  ;;  %v2153_v29 = vsel %vm620_vm12, %v559_v58, %v1932_v40  ;;  %637 = vst.msk [vmem:[%s1804_s23 + $0xc1] sm:$0xff] %vm620_vm12, %v557_v1  ;;  %v2159_v30 = vsel %vm620_vm12, %v557_v1, %v1934_v41 }
 0x10b   : > { %v563_v31 = vpop.permute.xlu1 %562  ;;  %v561_v32 = vpop.permute.xlu0 %560 }
 0x10c   : > { %640 = vst.msk [vmem:[%s1804_s23 + $0xe1] sm:$0xff] %vm620_vm12, %v563_v31  ;;  %v2165_v33 = vsel %vm620_vm12, %v563_v31, %v1946_v46  ;;  %639 = vst.msk [vmem:[%s1804_s23 + $0xd9] sm:$0xff] %vm620_vm12, %v561_v32  ;;  %v2171_v39 = vsel %vm620_vm12, %v561_v32, %v1948_v47  ;;  %v855_v32 = vsel %vm620_vm12, %v2058_v0, %v1814_v61 }
 0x10f   : > { %v567_v40 = vpop.permute.xlu1 %566  ;;  %v565_v41 = vpop.permute.xlu0 %564 }
 0x110   : > { %642 = vst.msk [vmem:[%s1804_s23 + $0xf9] sm:$0xff] %vm620_vm12, %v567_v40  ;;  %v2177_v14 = vsel %vm620_vm12, %v567_v40, %v1960_v48  ;;  %641 = vst.msk [vmem:[%s1804_s23 + $0xf1] sm:$0xff] %vm620_vm12, %v565_v41  ;;  %v2183_v46 = vsel %vm620_vm12, %v565_v41, %v1962_v49  ;;  %v184_v49 = vsub.s32 0, %v183_v8 }
 0x113   : > { %v571_v47 = vpop.permute.xlu1 %570  ;;  %v569_v13 = vpop.permute.xlu0 %568 }
 0x114   : > { %644 = vst.msk [vmem:[%s1804_s23 + $0x111] sm:$0xff] %vm620_vm12, %v571_v47  ;;  %v2190_v7 = vsel %vm620_vm12, %v571_v47, %v1974_v50  ;;  %643 = vst.msk [vmem:[%s1804_s23 + $0x109] sm:$0xff] %vm620_vm12, %v569_v13  ;;  %v2196_v48 = vsel %vm620_vm12, %v569_v13, %v1976_v51  ;;  %v185_v51 = vsel %vm179_vm0, %v184_v49, %v183_v8 }
 0x115   : > { %vm207_vm13 = vcmp.ne.s32.totalorder %v185_v51, 0  ;;  %vm211_vm14 = vcmp.lt.s32.totalorder %v185_v51, 0  ;;  %v219_v44 = vadd.s32 4, %v185_v51 }
 0x116   : > { %vm215_vm0 = vmand %vm211_vm14, %vm207_vm13 }
 0x117   : > { %v575_v12 = vpop.permute.xlu1 %574  ;;  %v573_v17 = vpop.permute.xlu0 %572  ;;  %v223_v16 = vsel %vm215_vm0, %v219_v44, %v185_v51  ;;  %v2541_v51 = vld [vmem:[#allocation10_spill] sm:$0xff] }
 0x118   : > { %646 = vst.msk [vmem:[%s1804_s23 + $0x129] sm:$0xff] %vm620_vm12, %v575_v12  ;;  %v2202_v18 = vsel %vm620_vm12, %v575_v12, %v1988_v56  ;;  %645 = vst.msk [vmem:[%s1804_s23 + $0x121] sm:$0xff] %vm620_vm12, %v573_v17  ;;  %v2208_v50 = vsel %vm620_vm12, %v573_v17, %v1990_v57  ;;  %vm279_vm4 = vcmp.ge.s32.totalorder %v223_v16, 2  ;;  %vm275_vm5 = vcmp.lt.s32.totalorder %v223_v16, 2 }
 0x11b   : > { %v579_v26 = vpop.permute.xlu1 %578  ;;  %v577_v27 = vpop.permute.xlu0 %576 }
 0x11c   : > { %648 = vst.msk [vmem:[%s1804_s23 + $0x141] sm:$0xff] %vm620_vm12, %v579_v26  ;;  %v2216_v35 = vsel %vm620_vm12, %v579_v26, %v2002_v62  ;;  %647 = vst.msk [vmem:[%s1804_s23 + $0x139] sm:$0xff] %vm620_vm12, %v577_v27  ;;  %v2222_v56 = vsel %vm620_vm12, %v577_v27, %v2004_v63  ;;  %v2539_v63 = vld [vmem:[#allocation8_spill] sm:$0xff]  ;;  %v197_v26 = vand.u32 3, %v2541_v51 }
 0x11d   : > { %v190_v54 = vand.u32 3, %v2539_v63 }
 0x11f   : > { %v583_v57 = vpop.permute.xlu1 %582  ;;  %v581_v36 = vpop.permute.xlu0 %580 }
 0x120   : > { %650 = vst.msk [vmem:[%s1804_s23 + $0x159] sm:$0xff] %vm620_vm12, %v583_v57  ;;  %v2228_v45 = vsel %vm620_vm12, %v583_v57, %v2016_v9  ;;  %649 = vst.msk [vmem:[%s1804_s23 + $0x151] sm:$0xff] %vm620_vm12, %v581_v36  ;;  %v2234_v62 = vsel %vm620_vm12, %v581_v36, %v2018_v10  ;;  %v191_v10 = vsub.s32 0, %v190_v54 }
 0x123   : > { %v587_v59 = vpop.permute.xlu1 %586  ;;  %v585_v15 = vpop.permute.xlu0 %584 }
 0x124   : > { %652 = vst.msk [vmem:[%s1804_s23 + $0x171] sm:$0xff] %vm620_vm12, %v587_v59  ;;  %v2241_v28 = vsel %vm620_vm12, %v587_v59, %v2030_v19  ;;  %651 = vst.msk [vmem:[%s1804_s23 + $0x169] sm:$0xff] %vm620_vm12, %v585_v15  ;;  %v2247_v9 = vsel %vm620_vm12, %v585_v15, %v2032_v20  ;;  %v854_v19 = vsel %vm620_vm12, %v2046_v34, %v1816_v4 }
 0x125   : > { %v192_v34 = vsel %vm186_vm3, %v191_v10, %v190_v54  ;;  %v198_v54 = vsub.s32 0, %v197_v26 }
 0x126   : > { %vm208_vm3 = vcmp.ne.s32.totalorder %v192_v34, 0  ;;  %vm212_vm8 = vcmp.lt.s32.totalorder %v192_v34, 0 }
 0x127   : > { %v728_v58 = vpop.permute.xlu1 %727  ;;  %v726_v20 = vpop.permute.xlu0 %725  ;;  %vm216_vm10 = vmand %vm212_vm8, %vm208_vm3 }
 0x128   : > { %823 = vst.msk [vmem:[%s1804_s23 + $0x9] sm:$0xff] %vm821_vm1, %v728_v58  ;;  %v944_v1 = vsel %vm870_vm2, %v928_v55, %v728_v58  ;;  %822 = vst.msk [vmem:[%s1804_s23 + $0x1] sm:$0xff] %vm821_vm1, %v726_v20  ;;  %v871_v31 = vsel %vm870_vm2, %v854_v19, %v726_v20  ;;  %v199_v19 = vsel %vm193_vm9, %v198_v54, %v197_v26 }
 0x129   : > { %v968_v25 = vsel %vm279_vm4, 0.0, %v944_v1  ;;  %v895_v43 = vsel %vm275_vm5, 0.0, %v871_v31  ;;  %vm209_vm9 = vcmp.ne.s32.totalorder %v199_v19, 0  ;;  %vm213_vm13 = vcmp.lt.s32.totalorder %v199_v19, 0 }
 0x12a   : > { %985 = vst.msk [vmem:[%s1804_s23 + $0xb] sm:$0x40] %vm984_vm6, %v968_v25  ;;  %vm217_vm14 = vmand %vm213_vm13, %vm209_vm9 }
 0x12b   : > { %912 = vst.msk [vmem:[%s1804_s23 - $0x1] sm:$0x2] %vm911_vm7, %v895_v43  ;;  %v732_v40 = vpop.permute.xlu1 %731  ;;  %v730_v41 = vpop.permute.xlu0 %729  ;;  %v221_v43 = vadd.s32 4, %v199_v19 }
 0x12c   : > { %825 = vst.msk [vmem:[%s1804_s23 + $0x21] sm:$0xff] %vm821_vm1, %v732_v40  ;;  %v945_v42 = vsel %vm870_vm2, %v2064_v3, %v732_v40  ;;  %824 = vst.msk [vmem:[%s1804_s23 + $0x19] sm:$0xff] %vm821_vm1, %v730_v41  ;;  %v872_v8 = vsel %vm870_vm2, %v855_v32, %v730_v41  ;;  %v220_v3 = vadd.s32 4, %v192_v34  ;;  %v2543_v40 = vld [vmem:[#allocation12_spill] sm:$0xff] }
 0x12d   : > { %v969_v47 = vsel %vm279_vm4, 0.0, %v945_v42  ;;  %v896_v13 = vsel %vm275_vm5, 0.0, %v872_v8  ;;  %v204_v41 = vand.u32 3, %v2543_v40  ;;  %v225_v8 = vsel %vm217_vm14, %v221_v43, %v199_v19 }
 0x12e   : > { %986 = vst.msk [vmem:[%s1804_s23 + $0x23] sm:$0x40] %vm984_vm6, %v969_v47  ;;  %v224_v57 = vsel %vm216_vm10, %v220_v3, %v192_v34  ;;  %vm281_vm0 = vcmp.ge.s32.totalorder %v225_v8, 2 }
 0x12f   : > { %913 = vst.msk [vmem:[%s1804_s23 + $0x17] sm:$0x2] %vm911_vm7, %v896_v13  ;;  %v736_v61 = vpop.permute.xlu1 %735  ;;  %v734_v0 = vpop.permute.xlu0 %733  ;;  %vm280_vm11 = vcmp.ge.s32.totalorder %v224_v57, 2  ;;  %vm276_vm12 = vcmp.lt.s32.totalorder %v224_v57, 2 }
 0x130   : > { %827 = vst.msk [vmem:[%s1804_s23 + $0x39] sm:$0xff] %vm821_vm1, %v736_v61  ;;  %v946_v49 = vsel %vm870_vm2, %v2077_v23, %v736_v61  ;;  %826 = vst.msk [vmem:[%s1804_s23 + $0x31] sm:$0xff] %vm821_vm1, %v734_v0  ;;  %v873_v12 = vsel %vm870_vm2, %v2083_v24, %v734_v0  ;;  %v205_v0 = vsub.s32 0, %v204_v41 }
 0x131   : > { %v970_v17 = vsel %vm279_vm4, 0.0, %v946_v49  ;;  %v897_v22 = vsel %vm275_vm5, 0.0, %v873_v12 }
 0x132   : > { %987 = vst.msk [vmem:[%s1804_s23 + $0x3b] sm:$0x40] %vm984_vm6, %v970_v17  ;;  %v206_v51 = vsel %vm200_vm15, %v205_v0, %v204_v41 }
 0x133   : > { %914 = vst.msk [vmem:[%s1804_s23 + $0x2f] sm:$0x2] %vm911_vm7, %v897_v22  ;;  %v740_v27 = vpop.permute.xlu1 %739  ;;  %v738_v23 = vpop.permute.xlu0 %737  ;;  %vm210_vm15 = vcmp.ne.s32.totalorder %v206_v51, 0 }
 0x134   : > { %829 = vst.msk [vmem:[%s1804_s23 + $0x51] sm:$0xff] %vm821_vm1, %v740_v27  ;;  %v947_v24 = vsel %vm870_vm2, %v2093_v37, %v740_v27  ;;  %828 = vst.msk [vmem:[%s1804_s23 + $0x49] sm:$0xff] %vm821_vm1, %v738_v23  ;;  %v874_v36 = vsel %vm870_vm2, %v2099_v38, %v738_v23 }
 0x135   : > { %v971_v44 = vsel %vm279_vm4, 0.0, %v947_v24  ;;  %v898_v63 = vsel %vm275_vm5, 0.0, %v874_v36  ;;  %vm277_vm4 = vcmp.lt.s32.totalorder %v225_v8, 2  ;;  %vm214_vm5 = vcmp.lt.s32.totalorder %v206_v51, 0 }
 0x136   : > { %988 = vst.msk [vmem:[%s1804_s23 + $0x53] sm:$0x40] %vm984_vm6, %v971_v44  ;;  %v222_v36 = vadd.s32 4, %v206_v51  ;;  %vm218_vm3 = vmand %vm214_vm5, %vm210_vm15 }
 0x137   : > { %915 = vst.msk [vmem:[%s1804_s23 + $0x47] sm:$0x2] %vm911_vm7, %v898_v63  ;;  %v744_v37 = vpop.permute.xlu1 %743  ;;  %v742_v59 = vpop.permute.xlu0 %741 }
 0x138   : > { %831 = vst.msk [vmem:[%s1804_s23 + $0x69] sm:$0xff] %vm821_vm1, %v744_v37  ;;  %v948_v38 = vsel %vm870_vm2, %v2105_v52, %v744_v37  ;;  %830 = vst.msk [vmem:[%s1804_s23 + $0x61] sm:$0xff] %vm821_vm1, %v742_v59  ;;  %v875_v15 = vsel %vm870_vm2, %v2111_v53, %v742_v59 }
 0x139   : > { %v972_v16 = vsel %vm280_vm11, 0.0, %v948_v38  ;;  %v899_v10 = vsel %vm276_vm12, 0.0, %v875_v15 }
 0x13a   : > { %989 = vst.msk [vmem:[%s1804_s23 + $0x6b] sm:$0x40] %vm984_vm6, %v972_v16 }
 0x13b   : > { %916 = vst.msk [vmem:[%s1804_s23 + $0x5f] sm:$0x2] %vm911_vm7, %v899_v10  ;;  %v748_v52 = vpop.permute.xlu1 %747  ;;  %v746_v58 = vpop.permute.xlu0 %745 }
 0x13c   : > { %833 = vst.msk [vmem:[%s1804_s23 + $0x81] sm:$0xff] %vm821_vm1, %v748_v52  ;;  %v949_v53 = vsel %vm870_vm2, %v2117_v60, %v748_v52  ;;  %832 = vst.msk [vmem:[%s1804_s23 + $0x79] sm:$0xff] %vm821_vm1, %v746_v58  ;;  %v876_v20 = vsel %vm870_vm2, %v2123_v5, %v746_v58 }
 0x13d   : > { %v973_v1 = vsel %vm280_vm11, 0.0, %v949_v53  ;;  %v900_v31 = vsel %vm276_vm12, 0.0, %v876_v20 }
 0x13e   : > { %990 = vst.msk [vmem:[%s1804_s23 + $0x83] sm:$0x40] %vm984_vm6, %v973_v1 }
 0x13f   : > { %917 = vst.msk [vmem:[%s1804_s23 + $0x77] sm:$0x2] %vm911_vm7, %v900_v31  ;;  %v752_v25 = vpop.permute.xlu1 %751  ;;  %v750_v60 = vpop.permute.xlu0 %749 }
 0x140   : > { %835 = vst.msk [vmem:[%s1804_s23 + $0x99] sm:$0xff] %vm821_vm1, %v752_v25  ;;  %v950_v5 = vsel %vm870_vm2, %v2129_v2, %v752_v25  ;;  %834 = vst.msk [vmem:[%s1804_s23 + $0x91] sm:$0xff] %vm821_vm1, %v750_v60  ;;  %v877_v4 = vsel %vm870_vm2, %v2135_v6, %v750_v60 }
 0x141   : > { %v974_v34 = vsel %vm280_vm11, 0.0, %v950_v5  ;;  %v901_v32 = vsel %vm276_vm12, 0.0, %v877_v4 }
 0x142   : > { %991 = vst.msk [vmem:[%s1804_s23 + $0x9b] sm:$0x40] %vm984_vm6, %v974_v34 }
 0x143   : > { %918 = vst.msk [vmem:[%s1804_s23 + $0x8f] sm:$0x2] %vm911_vm7, %v901_v32  ;;  %v756_v42 = vpop.permute.xlu1 %755  ;;  %v754_v2 = vpop.permute.xlu0 %753 }
 0x144   : > { %837 = vst.msk [vmem:[%s1804_s23 + $0xb1] sm:$0xff] %vm821_vm1, %v756_v42  ;;  %v951_v6 = vsel %vm870_vm2, %v2141_v21, %v756_v42  ;;  %836 = vst.msk [vmem:[%s1804_s23 + $0xa9] sm:$0xff] %vm821_vm1, %v754_v2  ;;  %v878_v47 = vsel %vm870_vm2, %v2147_v11, %v754_v2 }
 0x145   : > { %v975_v13 = vsel %vm280_vm11, 0.0, %v951_v6  ;;  %v902_v61 = vsel %vm276_vm12, 0.0, %v878_v47 }
 0x146   : > { %992 = vst.msk [vmem:[%s1804_s23 + $0xb3] sm:$0x40] %vm984_vm6, %v975_v13 }
 0x147   : > { %919 = vst.msk [vmem:[%s1804_s23 + $0xa7] sm:$0x2] %vm911_vm7, %v902_v61  ;;  %v760_v21 = vpop.permute.xlu1 %759  ;;  %v758_v3 = vpop.permute.xlu0 %757 }
 0x148   : > { %839 = vst.msk [vmem:[%s1804_s23 + $0xc9] sm:$0xff] %vm821_vm1, %v760_v21  ;;  %v952_v11 = vsel %vm870_vm2, %v2153_v29, %v760_v21  ;;  %838 = vst.msk [vmem:[%s1804_s23 + $0xc1] sm:$0xff] %vm821_vm1, %v758_v3  ;;  %v879_v49 = vsel %vm870_vm2, %v2159_v30, %v758_v3 }
 0x149   : > { %v976_v12 = vsel %vm281_vm0, 0.0, %v952_v11  ;;  %v903_v17 = vsel %vm277_vm4, 0.0, %v879_v49 }
 0x14a   : > { %993 = vst.msk [vmem:[%s1804_s23 + $0xcb] sm:$0x40] %vm984_vm6, %v976_v12 }
 0x14b   : > { %920 = vst.msk [vmem:[%s1804_s23 + $0xbf] sm:$0x2] %vm911_vm7, %v903_v17  ;;  %v764_v29 = vpop.permute.xlu1 %763  ;;  %v762_v26 = vpop.permute.xlu0 %761 }
 0x14c   : > { %841 = vst.msk [vmem:[%s1804_s23 + $0xe1] sm:$0xff] %vm821_vm1, %v764_v29  ;;  %v953_v30 = vsel %vm870_vm2, %v2165_v33, %v764_v29  ;;  %840 = vst.msk [vmem:[%s1804_s23 + $0xd9] sm:$0xff] %vm821_vm1, %v762_v26  ;;  %v880_v27 = vsel %vm870_vm2, %v2171_v39, %v762_v26 }
 0x14d   : > { %v977_v23 = vsel %vm281_vm0, 0.0, %v953_v30  ;;  %v904_v57 = vsel %vm277_vm4, 0.0, %v880_v27 }
 0x14e   : > { %994 = vst.msk [vmem:[%s1804_s23 + $0xe3] sm:$0x40] %vm984_vm6, %v977_v23 }
 0x14f   : > { %921 = vst.msk [vmem:[%s1804_s23 + $0xd7] sm:$0x2] %vm911_vm7, %v904_v57  ;;  %v768_v24 = vpop.permute.xlu1 %767  ;;  %v766_v33 = vpop.permute.xlu0 %765 }
 0x150   : > { %843 = vst.msk [vmem:[%s1804_s23 + $0xf9] sm:$0xff] %vm821_vm1, %v768_v24  ;;  %v954_v39 = vsel %vm870_vm2, %v2177_v14, %v768_v24  ;;  %842 = vst.msk [vmem:[%s1804_s23 + $0xf1] sm:$0xff] %vm821_vm1, %v766_v33  ;;  %v881_v44 = vsel %vm870_vm2, %v2183_v46, %v766_v33  ;;  %v226_v14 = vsel %vm218_vm3, %v222_v36, %v206_v51 }
 0x151   : > { %v978_v63 = vsel %vm281_vm0, 0.0, %v954_v39  ;;  %v905_v54 = vsel %vm277_vm4, 0.0, %v881_v44  ;;  %vm282_vm8 = vcmp.ge.s32.totalorder %v226_v14, 2  ;;  %vm278_vm10 = vcmp.lt.s32.totalorder %v226_v14, 2 }
 0x152   : > { %995 = vst.msk [vmem:[%s1804_s23 + $0xfb] sm:$0x40] %vm984_vm6, %v978_v63 }
 0x153   : > { %922 = vst.msk [vmem:[%s1804_s23 + $0xef] sm:$0x2] %vm911_vm7, %v905_v54  ;;  %v772_v37 = vpop.permute.xlu1 %771  ;;  %v770_v59 = vpop.permute.xlu0 %769 }
 0x154   : > { %845 = vst.msk [vmem:[%s1804_s23 + $0x111] sm:$0xff] %vm821_vm1, %v772_v37  ;;  %v955_v46 = vsel %vm870_vm2, %v2190_v7, %v772_v37  ;;  %844 = vst.msk [vmem:[%s1804_s23 + $0x109] sm:$0xff] %vm821_vm1, %v770_v59  ;;  %v882_v38 = vsel %vm870_vm2, %v2196_v48, %v770_v59 }
 0x155   : > { %v979_v15 = vsel %vm281_vm0, 0.0, %v955_v46  ;;  %v906_v16 = vsel %vm277_vm4, 0.0, %v882_v38 }
 0x156   : > { %996 = vst.msk [vmem:[%s1804_s23 + $0x113] sm:$0x40] %vm984_vm6, %v979_v15 }
 0x157   : > { %923 = vst.msk [vmem:[%s1804_s23 + $0x107] sm:$0x2] %vm911_vm7, %v906_v16  ;;  %v776_v7 = vpop.permute.xlu1 %775  ;;  %v774_v10 = vpop.permute.xlu0 %773 }
 0x158   : > { %847 = vst.msk [vmem:[%s1804_s23 + $0x129] sm:$0xff] %vm821_vm1, %v776_v7  ;;  %v956_v48 = vsel %vm870_vm2, %v2202_v18, %v776_v7  ;;  %846 = vst.msk [vmem:[%s1804_s23 + $0x121] sm:$0xff] %vm821_vm1, %v774_v10  ;;  %v883_v55 = vsel %vm870_vm2, %v2208_v50, %v774_v10 }
 0x159   : > { %v980_v19 = vsel %vm282_vm8, 0.0, %v956_v48  ;;  %v907_v52 = vsel %vm278_vm10, 0.0, %v883_v55 }
 0x15a   : > { %997 = vst.msk [vmem:[%s1804_s23 + $0x12b] sm:$0x40] %vm984_vm6, %v980_v19 }
 0x15b   : > { %924 = vst.msk [vmem:[%s1804_s23 + $0x11f] sm:$0x2] %vm911_vm7, %v907_v52  ;;  %v780_v58 = vpop.permute.xlu1 %779  ;;  %v778_v53 = vpop.permute.xlu0 %777 }
 0x15c   : > { %849 = vst.msk [vmem:[%s1804_s23 + $0x141] sm:$0xff] %vm821_vm1, %v780_v58  ;;  %v957_v18 = vsel %vm870_vm2, %v2216_v35, %v780_v58  ;;  %848 = vst.msk [vmem:[%s1804_s23 + $0x139] sm:$0xff] %vm821_vm1, %v778_v53  ;;  %v884_v50 = vsel %vm870_vm2, %v2222_v56, %v778_v53 }
 0x15d   : > { %v981_v20 = vsel %vm282_vm8, 0.0, %v957_v18  ;;  %v908_v1 = vsel %vm278_vm10, 0.0, %v884_v50 }
 0x15e   : > { %998 = vst.msk [vmem:[%s1804_s23 + $0x143] sm:$0x40] %vm984_vm6, %v981_v20 }
 0x15f   : > { %925 = vst.msk [vmem:[%s1804_s23 + $0x137] sm:$0x2] %vm911_vm7, %v908_v1  ;;  %v784_v31 = vpop.permute.xlu1 %783  ;;  %v782_v25 = vpop.permute.xlu0 %781 }
 0x160   : > { %851 = vst.msk [vmem:[%s1804_s23 + $0x159] sm:$0xff] %vm821_vm1, %v784_v31  ;;  %v958_v35 = vsel %vm870_vm2, %v2228_v45, %v784_v31  ;;  %850 = vst.msk [vmem:[%s1804_s23 + $0x151] sm:$0xff] %vm821_vm1, %v782_v25  ;;  %v885_v56 = vsel %vm870_vm2, %v2234_v62, %v782_v25 }
 0x161   : > { %v982_v60 = vsel %vm282_vm8, 0.0, %v958_v35  ;;  %v909_v43 = vsel %vm278_vm10, 0.0, %v885_v56 }
 0x162   : > { %999 = vst.msk [vmem:[%s1804_s23 + $0x15b] sm:$0x40] %vm984_vm6, %v982_v60 }
 0x163   : > { %926 = vst.msk [vmem:[%s1804_s23 + $0x14f] sm:$0x2] %vm911_vm7, %v909_v43  ;;  %v788_v5 = vpop.permute.xlu1 %787  ;;  %v786_v4 = vpop.permute.xlu0 %785 }
 0x164   : > { %853 = vst.msk [vmem:[%s1804_s23 + $0x171] sm:$0xff] %vm821_vm1, %v788_v5  ;;  %v959_v45 = vsel %vm870_vm2, %v2241_v28, %v788_v5  ;;  %852 = vst.msk [vmem:[%s1804_s23 + $0x169] sm:$0xff] %vm821_vm1, %v786_v4  ;;  %v886_v62 = vsel %vm870_vm2, %v2247_v9, %v786_v4 }
 0x165   : > { %v983_v34 = vsel %vm282_vm8, 0.0, %v959_v45  ;;  %v910_v32 = vsel %vm278_vm10, 0.0, %v886_v62 }
 0x166   : > { %1000 = vst.msk [vmem:[%s1804_s23 + $0x173] sm:$0x40] %vm984_vm6, %v983_v34 }
 0x167   : > { %927 = vst.msk [vmem:[%s1804_s23 + $0x167] sm:$0x2] %vm911_vm7, %v910_v32 }
 0x168 PF: > { %p11_p8 = scmp.ge.s32.totalorder %s1242_s11, 4   ;;  %s2545_s6 = smov %s1196_s7 }
 0x169   : > { %s2546_s7 = smov %s1200_s8  ;;  %s2547_s8 = smov %s1252_s14 }
 0x16a   : > { %s2548_s9 = smov %s1242_s11  ;;  %13 = sbr.rel (!%p11_p8) target bundleno = 3 (0x3), region = 64 }
 0x171   :  { %1025 = vsyncpa [#allocation3], 1 }
 0x172   :  { %1027 = vsyncpa [#allocation3 + $0x1], 1 }

</bundles_post_ra>
